<compile_context>
chip_gen: v5e
topology: v5e:2x2
jax: 0.10.0
libtpu: 0.0.40
codegen_flags: <defaults>
</compile_context>

<pallas_src>
import jax
import jax.numpy as jnp
from jax.experimental import pallas as pl
from jax.experimental.pallas import tpu as pltpu

LANE = 128      # lane width (last dim)
SUBLANE = 8     # f32 sublane count (second-to-last dim)


def _round_up(x: int, m: int) -> int:
    return ((x + m - 1) // m) * m


def _cdiv(a: int, b: int) -> int:
    return -(-a // b)


def mlp_kernel(x_ref, w1_ref, b1_ref, w2_ref, b2_ref, o_ref):
    # fc1: x @ W1^T + b1 ; weights pre-transposed/padded once in prepare_params.
    x = x_ref[...]                                              # (TB, in_f)
    h = jnp.dot(x, w1_ref[...],
                preferred_element_type=jnp.float32)             # (TB, hid_p)
    h = jnp.maximum(h + b1_ref[...], 0.0)                       # bias + ReLU (VPU)
    # fc2: h @ W2^T + b2
    y = jnp.dot(h, w2_ref[...],
                preferred_element_type=jnp.float32)             # (TB, out_f)
    o_ref[...] = (y + b2_ref[...]).astype(o_ref.dtype)


def prepare_params(w1, b1, w2, b2, dtype=jnp.float32):
    """One-time parameter prep (transpose + pad). Cache the result.

    w1: (hid_f, in_f), b1: (hid_f,), w2: (out_f, hid_f), b2: (out_f,).
    Only the hidden axis is padded to 128 lanes (it never touches HBM as an
    activation); in_f / out_f stay at their logical sizes.
    """
    hid_f, in_f = w1.shape
    out_f = w2.shape[0]
    hid_p = _round_up(hid_f, LANE)

    w1t = jnp.zeros((in_f, hid_p), dtype).at[:, :hid_f].set(w1.T.astype(dtype))
    b1p = jnp.zeros((1, hid_p), dtype).at[0, :hid_f].set(b1.astype(dtype))
    w2t = jnp.zeros((hid_p, out_f), dtype).at[:hid_f, :].set(w2.T.astype(dtype))
    b2p = b2.astype(dtype).reshape(1, out_f)
    return w1t, b1p, w2t, b2p


def simple_model_forward(x, params, *, max_tile_b=1024):
    """x: (B, in_f); params: output of prepare_params()."""
    w1t, b1p, w2t, b2p = params
    B, in_f = x.shape
    hid_p = w1t.shape[1]
    out_f = w2t.shape[1]
    dt = x.dtype

    # --- batch tiling: pad B to a multiple of 8 and split evenly ---
    b8 = _round_up(B, SUBLANE)
    num_tiles = _cdiv(b8, max_tile_b)
    if num_tiles == 1 and b8 >= 2 * SUBLANE:
        num_tiles = 2                      # let v7x's 2 TCs both work
    elif num_tiles > 2 and num_tiles % 2 == 1:
        num_tiles += 1                     # even tile count -> no idle-TC tail
    tile_b = _round_up(_cdiv(b8, num_tiles), SUBLANE)
    num_tiles = _cdiv(b8, tile_b)
    b_pad = tile_b * num_tiles

    if b_pad != B:
        x_in = jnp.zeros((b_pad, in_f), dt).at[:B, :].set(x)
    else:
        x_in = x

    out = pl.pallas_call(
        mlp_kernel,
        out_shape=jax.ShapeDtypeStruct((b_pad, out_f), dt),
        grid=(num_tiles,),
        in_specs=[
            # Activations: tiled over batch, feature dim = full array dim (no pad).
            pl.BlockSpec((tile_b, in_f), lambda i: (i, 0)),
            # Weights / biases: constant block index -> stay VMEM-resident.
            pl.BlockSpec((in_f, hid_p), lambda i: (0, 0)),
            pl.BlockSpec((1, hid_p), lambda i: (0, 0)),
            pl.BlockSpec((hid_p, out_f), lambda i: (0, 0)),
            pl.BlockSpec((1, out_f), lambda i: (0, 0)),
        ],
        out_specs=pl.BlockSpec((tile_b, out_f), lambda i: (i, 0)),
        compiler_params=pltpu.CompilerParams(
            dimension_semantics=("parallel",),
        ),
    )(x_in, w1t, b1p, w2t, b2p)

    return out[:B, :] if b_pad != B else out


def reference_forward(x, w1, b1, w2, b2):
    h = jnp.maximum(x @ w1.T + b1, 0.0)
    return h @ w2.T + b2


if __name__ == "__main__":
    key = jax.random.PRNGKey(0)
    k_x, k_w1, k_b1, k_w2, k_b2 = jax.random.split(key, 5)

    batch = 2
    in_f, hid_f, out_f = 4, 3, 2

    x = jax.random.normal(k_x, (batch, in_f), dtype=jnp.float32)

    # Deterministic parameter init (PyTorch-Linear-like uniform ranges).
    def uniform_init(k, shape, fan_in):
        bound = 1.0 / (fan_in ** 0.5)
        return jax.random.uniform(k, shape, jnp.float32, -bound, bound)

    w1 = uniform_init(k_w1, (hid_f, in_f), in_f)    # fc1.weight: (3, 4)
    b1 = uniform_init(k_b1, (hid_f,), in_f)         # fc1.bias:   (3,)
    w2 = uniform_init(k_w2, (out_f, hid_f), hid_f)  # fc2.weight: (2, 3)
    b2 = uniform_init(k_b2, (out_f,), hid_f)        # fc2.bias:   (2,)

    # One-time parameter prep (would be cached alongside the params in practice).
    params = prepare_params(w1, b1, w2, b2)

    out = simple_model_forward(x, params)
    out = jax.block_until_ready(out)

    ref = reference_forward(x, w1, b1, w2, b2)
    assert out.shape == (batch, out_f)
    assert jnp.allclose(out, ref, atol=1e-5, rtol=1e-5)

    print("KERNEL_OK")
</pallas_src>

<mosaic_0001>
module attributes {stable_mosaic.version = 11 : i64} {
  func.func @mlp_kernel(%arg0: i32, %arg1: memref<8x4xf32, #tpu.memory_space<vmem>>, %arg2: memref<4x128xf32, #tpu.memory_space<vmem>>, %arg3: memref<1x128xf32, #tpu.memory_space<vmem>>, %arg4: memref<128x2xf32, #tpu.memory_space<vmem>>, %arg5: memref<1x2xf32, #tpu.memory_space<vmem>>, %arg6: memref<8x2xf32, #tpu.memory_space<vmem>>) attributes {dimension_semantics = [#tpu.dimension_semantics<parallel>], iteration_bounds = array<i64: 1>, scalar_prefetch = 0 : i64, scratch_operands = 0 : i64, tpu.core_type = #tpu.core_type<tc>, window_params = [{transform_indices = @transform_0, window_bounds = array<i64: 8, 4>}, {pipeline_mode = #tpu.pipeline_mode<synchronous>, transform_indices = @transform_1, window_bounds = array<i64: 4, 128>}, {pipeline_mode = #tpu.pipeline_mode<synchronous>, transform_indices = @transform_2, window_bounds = array<i64: 1, 128>}, {pipeline_mode = #tpu.pipeline_mode<synchronous>, transform_indices = @transform_3, window_bounds = array<i64: 128, 2>}, {pipeline_mode = #tpu.pipeline_mode<synchronous>, transform_indices = @transform_4, window_bounds = array<i64: 1, 2>}, {transform_indices = @transform_5, window_bounds = array<i64: 8, 2>}]} {
    %c0 = arith.constant 0 : index
    %c0_0 = arith.constant 0 : index
    %0 = vector.load %arg1[%c0, %c0_0] : memref<8x4xf32, #tpu.memory_space<vmem>>, vector<8x4xf32>
    %c0_1 = arith.constant 0 : index
    %c0_2 = arith.constant 0 : index
    %1 = vector.load %arg2[%c0_1, %c0_2] : memref<4x128xf32, #tpu.memory_space<vmem>>, vector<4x128xf32>
    %cst = arith.constant dense<0.000000e+00> : vector<8x128xf32>
    %2 = tpu.matmul %0, %1, %cst {dimension_numbers = #tpu.dot_dimension_numbers<[1], [0], [0], [1], [0, 0, 1, 1], [], []>} : vector<8x4xf32>, vector<4x128xf32>, vector<8x128xf32> -> vector<8x128xf32>
    %c0_3 = arith.constant 0 : index
    %c0_4 = arith.constant 0 : index
    %3 = vector.load %arg3[%c0_3, %c0_4] : memref<1x128xf32, #tpu.memory_space<vmem>>, vector<1x128xf32>
    %4 = vector.broadcast %3 : vector<1x128xf32> to vector<8x128xf32>
    %5 = arith.addf %2, %4 : vector<8x128xf32>
    %cst_5 = arith.constant 0.000000e+00 : f32
    %6 = vector.broadcast %cst_5 : f32 to vector<8x128xf32>
    %7 = arith.maximumf %5, %6 : vector<8x128xf32>
    %c0_6 = arith.constant 0 : index
    %c0_7 = arith.constant 0 : index
    %8 = vector.load %arg4[%c0_6, %c0_7] : memref<128x2xf32, #tpu.memory_space<vmem>>, vector<128x2xf32>
    %cst_8 = arith.constant dense<0.000000e+00> : vector<8x2xf32>
    %9 = tpu.matmul %7, %8, %cst_8 {dimension_numbers = #tpu.dot_dimension_numbers<[1], [0], [0], [1], [0, 0, 1, 1], [], []>} : vector<8x128xf32>, vector<128x2xf32>, vector<8x2xf32> -> vector<8x2xf32>
    %c0_9 = arith.constant 0 : index
    %c0_10 = arith.constant 0 : index
    %10 = vector.load %arg5[%c0_9, %c0_10] : memref<1x2xf32, #tpu.memory_space<vmem>>, vector<1x2xf32>
    %11 = vector.broadcast %10 : vector<1x2xf32> to vector<8x2xf32>
    %12 = arith.addf %9, %11 : vector<8x2xf32>
    %c0_11 = arith.constant 0 : index
    %c0_12 = arith.constant 0 : index
    %13 = vector.load %arg6[%c0_11, %c0_12] : memref<8x2xf32, #tpu.memory_space<vmem>>, vector<8x2xf32>
    tpu.vector_store %arg6[%c0_11, %c0_12], %12 {strides = array<i32>} : memref<8x2xf32, #tpu.memory_space<vmem>>, vector<8x2xf32>,
    return
  }
  func.func @transform_0(%arg0: i32) -> (i32, i32) {
    %c0_i32 = arith.constant 0 : i32
    %c0_i32_0 = arith.constant 0 : i32
    return %arg0, %c0_i32 : i32, i32
  }
  func.func @transform_1(%arg0: i32) -> (i32, i32) {
    %c0_i32 = arith.constant 0 : i32
    %c0_i32_0 = arith.constant 0 : i32
    %c0_i32_1 = arith.constant 0 : i32
    return %c0_i32, %c0_i32_0 : i32, i32
  }
  func.func @transform_2(%arg0: i32) -> (i32, i32) {
    %c0_i32 = arith.constant 0 : i32
    %c0_i32_0 = arith.constant 0 : i32
    %c0_i32_1 = arith.constant 0 : i32
    return %c0_i32, %c0_i32_0 : i32, i32
  }
  func.func @transform_3(%arg0: i32) -> (i32, i32) {
    %c0_i32 = arith.constant 0 : i32
    %c0_i32_0 = arith.constant 0 : i32
    %c0_i32_1 = arith.constant 0 : i32
    return %c0_i32, %c0_i32_0 : i32, i32
  }
  func.func @transform_4(%arg0: i32) -> (i32, i32) {
    %c0_i32 = arith.constant 0 : i32
    %c0_i32_0 = arith.constant 0 : i32
    %c0_i32_1 = arith.constant 0 : i32
    return %c0_i32, %c0_i32_0 : i32, i32
  }
  func.func @transform_5(%arg0: i32) -> (i32, i32) {
    %c0_i32 = arith.constant 0 : i32
    %c0_i32_0 = arith.constant 0 : i32
    return %arg0, %c0_i32 : i32, i32
  }
}

</mosaic_0001>

<bundles_post_ra>
// kernel: tpu_custom_call.1
= control target key start
LH: loop header
LB: loop body
LE: loop exit
PB: predicated region body
PF: predicated region fallthrough
CT: control target
= control target key end

     0   :  { %vm30_vm0 = vcmask 1043456   ;;  %vm26_vm1 = vcmask 31744   ;;  %vm95_vm2 = vcmask 15360   ;;  %s198_s1 = inlined_call_operand.vmem [shape: f32[4,128], index: 1, kind: input, shape index: {}]   ;;  %s199_s0 = inlined_call_operand.vmem [shape: f32[8,4], index: 0, kind: input, shape index: {}]   ;;  %s200_s3 = inlined_call_operand.vmem [shape: f32[128,2], index: 3, kind: input, shape index: {}]   ;;  %s201_s2 = inlined_call_operand.vmem [shape: f32[1,128], index: 2, kind: input, shape index: {}]   ;;  %s202_s4 = inlined_call_operand.vmem [shape: f32[1,2], index: 4, kind: input, shape index: {}]   ;;  %s203_s5 = inlined_call_operand.vmem [shape: f32[8,2], index: 5, kind: output, shape index: {}]  }
   0x1   :  { %v21_v0 = vld [vmem:[%s198_s1] sm:$0xf]  ;;  %v70_v2 = vld [vmem:[%s200_s3 + $0x78] sm:$0xff]  ;;  %v69_v3 = vld [vmem:[%s200_s3 + $0x70] sm:$0xff] }
   0x2   :  { %v20_v1 = vld [vmem:[%s199_s0] sm:$0xff]  ;;  %101 = vmatpush.msk.msra.mxu0 %vm30_vm0, %v21_v0  ;;  %75 = vmatpush.msra.mxu1 %v70_v2  ;;  %v68_v4 = vld [vmem:[%s200_s3 + $0x68] sm:$0xff]  ;;  %v66_v6 = vld [vmem:[%s200_s3 + $0x58] sm:$0xff] }
   0x3   :  { %102 = vmatmul.msk.f32.vlgmr.msra.gmra.mxu0 %vm26_vm1, %v20_v1  ;;  %v67_v5 = vld [vmem:[%s200_s3 + $0x60] sm:$0xff]  ;;  %v65_v7 = vld [vmem:[%s200_s3 + $0x50] sm:$0xff]  ;;  %v64_v8 = vld [vmem:[%s200_s3 + $0x48] sm:$0xff] }
   0x4   :  { %76 = vmatpush.msra.mxu1 %v69_v3  ;;  %v63_v9 = vld [vmem:[%s200_s3 + $0x40] sm:$0xff]  ;;  %v62_v10 = vld [vmem:[%s200_s3 + $0x38] sm:$0xff]  ;;  %v61_v11 = vld [vmem:[%s200_s3 + $0x30] sm:$0xff] }
   0x5   :  { %v60_v12 = vld [vmem:[%s200_s3 + $0x28] sm:$0xff]  ;;  %v59_v13 = vld [vmem:[%s200_s3 + $0x20] sm:$0xff]  ;;  %v58_v14 = vld [vmem:[%s200_s3 + $0x18] sm:$0xff] }
   0x6   :  { %77 = vmatpush.msra.mxu1 %v68_v4  ;;  %v57_v15 = vld [vmem:[%s200_s3 + $0x10] sm:$0xff]  ;;  %v56_v16 = vld [vmem:[%s200_s3 + $0x8] sm:$0xff]  ;;  %v55_v17 = vld [vmem:[%s200_s3] sm:$0xff] }
   0x7   :  { %v103_v18 = vld [vmem:[%s201_s2] ss:$0 sm:$0xff] }
   0x8   :  { %78 = vmatpush.msra.mxu1 %v67_v5  ;;  %v104_v22 = vld [vmem:[%s202_s4] ss:$0 sm:$0xff] }
   0xa   :  { %79 = vmatpush.msra.mxu1 %v66_v6 }
   0xc   :  { %80 = vmatpush.msra.mxu1 %v65_v7 }
   0xe   :  { %81 = vmatpush.msra.mxu1 %v64_v8 }
  0x10   :  { %82 = vmatpush.msra.mxu1 %v63_v9 }
  0x12   :  { %83 = vmatpush.msra.mxu1 %v62_v10 }
  0x14   :  { %84 = vmatpush.msra.mxu1 %v61_v11 }
  0x16   :  { %85 = vmatpush.msra.mxu1 %v60_v12 }
  0x18   :  { %86 = vmatpush.msra.mxu1 %v59_v13 }
  0x1a   :  { %87 = vmatpush.msra.mxu1 %v58_v14 }
  0x1c   :  { %88 = vmatpush.msra.mxu1 %v57_v15 }
  0x1e   :  { %89 = vmatpush.msra.mxu1 %v56_v16 }
  0x20   :  { %90 = vmatpush.msra.mxu1 %v55_v17 }
  0x80   :  { %v51_v19 = vpop.f32.mrf.mxu0 }
  0x81   :  { %v52_v20 = vadd.f32 %v103_v18, %v51_v19 }
  0x83   :  { %v54_v21 = vmax.f32 %v52_v20, 0.0 }
  0x85   :  { %91 = vmatmul.f32.vlgmr.msra.gmra.mxu1 %v54_v21 }
 0x102   :  { %v92_v23 = vpop.f32.mrf.mxu1 }
 0x103   :  { %v93_v24 = vadd.f32 %v104_v22, %v92_v23 }
 0x105   :  { %96 = vst.msk [vmem:[%s203_s5] sm:$0xff] %vm95_vm2, %v93_v24 }

</bundles_post_ra>
